<compile_context>
chip_gen: v7x
topology: tpu7x:2x2x1
jax: 0.10.0
libtpu: 0.0.40
codegen_flags: <defaults>
</compile_context>

<pallas_src>
import functools

import jax
import jax.numpy as jnp
import numpy as np
from jax import lax
from jax.experimental import pallas as pl
from jax.experimental.pallas import tpu as pltpu

EPS = 1e-5
_VMEM_LIMIT = 48 * 1024 * 1024      # above the 32 MiB scoped default, below v7x's 64 MiB physical
_BLOCK_BUDGET = 8 * 1024 * 1024     # double-buffered f32 row-block budget per pipeline


def _pick_t_tile(T, feat_elems):
    """Rows per block along T: largest multiple-of-8 divisor of T whose double-buffered f32
    footprint (x + net + out slabs) fits _BLOCK_BUDGET; falls back to the full axis."""
    cap = max(1, _BLOCK_BUDGET // max(1, 8 * feat_elems))   # 4 B/elem * 2 buffers
    if T <= cap:
        return T
    best = None
    for d in range(8, cap + 1, 8):
        if T % d == 0:
            best = d
    return best if best is not None else T


# ----------------------------------------------------------------------------- kernels

def _head_kernel(x_ref, c_ref, wcat_ref, bcat_ref, sum0_ref, ssq0_ref, par_ref):
    """BN_0 one-pass stats (sum, sum^2) over x + fused conditional gamma/beta matmul."""
    b = pl.program_id(0)
    i = pl.program_id(1)

    @pl.when(jnp.logical_and(b == 0, i == 0))
    def _():
        sum0_ref[...] = jnp.zeros_like(sum0_ref)
        ssq0_ref[...] = jnp.zeros_like(ssq0_ref)
        # All four 1x1 "conditional" convs fused into one tiny MXU matmul: c @ [Wg0|Wb0|Wg1|Wb1]
        par_ref[...] = (
            jnp.dot(c_ref[...], wcat_ref[...], preferred_element_type=jnp.float32)
            + bcat_ref[...]
        )

    x = x_ref[...]                                          # (Tt, F_in), f32, lane-dense in F
    sum0_ref[...] += jnp.sum(x, axis=0, keepdims=True)      # sublane reduction -> (1, F_in)
    ssq0_ref[...] += jnp.sum(x * x, axis=0, keepdims=True)


def _mid_kernel(x_ref, sum0_ref, ssq0_ref, g0_ref, be0_ref, w0_ref, b0_ref,
                net_ref, sum1_ref, ssq1_ref, *, inv_n):
    """BN_0 normalize -> conditional affine -> ReLU -> fc_0, accumulating BN_1 stats."""
    b = pl.program_id(0)
    i = pl.program_id(1)

    @pl.when(jnp.logical_and(b == 0, i == 0))
    def _():
        sum1_ref[...] = jnp.zeros_like(sum1_ref)
        ssq1_ref[...] = jnp.zeros_like(ssq1_ref)

    mean = sum0_ref[...] * inv_n                            # (1, F_in)
    var = ssq0_ref[...] * inv_n - mean * mean               # biased variance
    scale = lax.rsqrt(var + EPS)

    gamma = g0_ref[pl.ds(b, 1), :]                          # (1, F_in)  per-batch conditional affine
    beta = be0_ref[pl.ds(b, 1), :]

    x = x_ref[...]                                          # (Tt, F_in)
    h = gamma * ((x - mean) * scale) + beta
    h = jnp.maximum(h, 0.0)                                 # ReLU
    net = jnp.dot(h, w0_ref[...], preferred_element_type=jnp.float32) + b0_ref[...]
    net_ref[...] = net                                      # (Tt, H), lane-dense store

    sum1_ref[...] += jnp.sum(net, axis=0, keepdims=True)
    ssq1_ref[...] += jnp.sum(net * net, axis=0, keepdims=True)


def _make_tail_kernel(inv_n, has_proj):
    """BN_1 normalize -> conditional affine -> ReLU -> fc_1, shortcut + residual add."""
    def kernel(*refs):
        if has_proj:
            (net_ref, x_ref, sum1_ref, ssq1_ref, g1_ref, be1_ref,
             w1_ref, b1_ref, ws_ref, out_ref) = refs
        else:
            (net_ref, x_ref, sum1_ref, ssq1_ref, g1_ref, be1_ref,
             w1_ref, b1_ref, out_ref) = refs
            ws_ref = None

        b = pl.program_id(0)

        mean = sum1_ref[...] * inv_n                        # (1, H)
        var = ssq1_ref[...] * inv_n - mean * mean
        scale = lax.rsqrt(var + EPS)

        gamma = g1_ref[pl.ds(b, 1), :]                      # (1, H)
        beta = be1_ref[pl.ds(b, 1), :]

        net = net_ref[...]                                  # (Tt, H)
        h = gamma * ((net - mean) * scale) + beta
        h = jnp.maximum(h, 0.0)
        dx = jnp.dot(h, w1_ref[...], preferred_element_type=jnp.float32) + b1_ref[...]

        x = x_ref[...]                                      # (Tt, F_in)
        if has_proj:
            x_s = jnp.dot(x, ws_ref[...], preferred_element_type=jnp.float32)
        else:
            x_s = x                                         # identity shortcut
        out_ref[...] = (x_s + dx).astype(out_ref.dtype)
    return kernel


# ----------------------------------------------------------------------------- wrapper

def cresnet_block_conv1d(x, c, params):
    """CResnetBlockConv1d forward (training-mode BN).

    x: (B, size_in, T) f32 (PyTorch NCW), c: (B, c_dim) f32.
    params: dict of PyTorch-shaped tensors: Conv1d weights (out, in, 1), biases (out,);
            keys bn{0,1}_{gamma,beta}_{w,b}, fc{0,1}_{w,b}, shortcut_w (or None).
    Returns (B, size_out, T).
    """
    B, F_in, T = x.shape
    C = c.shape[1]
    H = params["fc0_w"].shape[0]
    F_out = params["fc1_w"].shape[0]
    has_proj = params.get("shortcut_w", None) is not None
    if not has_proj and F_in != F_out:
        raise ValueError("identity shortcut requires size_in == size_out")
    P = 2 * F_in + 2 * H
    f32 = jnp.float32

    # Layout plumbing (outside the kernels): channels-last so F sits on TPU lanes.
    xt = jnp.transpose(x, (0, 2, 1)).astype(f32)            # (B, T, F_in)
    c32 = c.astype(f32)

    def conv_w(w):   # PyTorch Conv1d weight (out, in, 1) -> matmul operand (in, out)
        return jnp.transpose(w[:, :, 0], (1, 0)).astype(f32)

    # Fused conditional-affine parameters for both CBN layers.
    wcat = jnp.concatenate([conv_w(params["bn0_gamma_w"]), conv_w(params["bn0_beta_w"]),
                            conv_w(params["bn1_gamma_w"]), conv_w(params["bn1_beta_w"])],
                           axis=1)                          # (C, P)
    bcat = jnp.concatenate([params["bn0_gamma_b"], params["bn0_beta_b"],
                            params["bn1_gamma_b"], params["bn1_beta_b"]]).astype(f32)[None, :]

    w0 = conv_w(params["fc0_w"]); b0 = params["fc0_b"].astype(f32)[None, :]   # (F_in,H),(1,H)
    w1 = conv_w(params["fc1_w"]); b1 = params["fc1_b"].astype(f32)[None, :]   # (H,F_out),(1,F_out)
    ws = conv_w(params["shortcut_w"]) if has_proj else None                   # (F_in,F_out)

    tt = _pick_t_tile(T, F_in + H + F_out)
    nt = T // tt
    inv_n = 1.0 / float(B * T)

    acc_params = pltpu.CompilerParams(
        dimension_semantics=("arbitrary", "arbitrary"),     # global-stat accumulation
        vmem_limit_bytes=_VMEM_LIMIT)

    # ---- K1: BN_0 stats + conditional gamma/beta ----
    sum0, ssq0, par = pl.pallas_call(
        _head_kernel,
        grid=(B, nt),
        in_specs=[
            pl.BlockSpec((None, tt, F_in), lambda b, i: (b, i, 0)),
            pl.BlockSpec((B, C), lambda b, i: (0, 0)),
            pl.BlockSpec((C, P), lambda b, i: (0, 0)),
            pl.BlockSpec((1, P), lambda b, i: (0, 0)),
        ],
        out_specs=(
            pl.BlockSpec((1, F_in), lambda b, i: (0, 0)),
            pl.BlockSpec((1, F_in), lambda b, i: (0, 0)),
            pl.BlockSpec((B, P), lambda b, i: (0, 0)),
        ),
        out_shape=(
            jax.ShapeDtypeStruct((1, F_in), f32),
            jax.ShapeDtypeStruct((1, F_in), f32),
            jax.ShapeDtypeStruct((B, P), f32),
        ),
        compiler_params=acc_params,
    )(xt, c32, wcat, bcat)

    g0, be0 = par[:, :F_in], par[:, F_in:2 * F_in]
    g1, be1 = par[:, 2 * F_in:2 * F_in + H], par[:, 2 * F_in + H:]

    # ---- K2: BN_0 -> ReLU -> fc_0 (+ BN_1 stats) ----
    net, sum1, ssq1 = pl.pallas_call(
        functools.partial(_mid_kernel, inv_n=inv_n),
        grid=(B, nt),
        in_specs=[
            pl.BlockSpec((None, tt, F_in), lambda b, i: (b, i, 0)),
            pl.BlockSpec((1, F_in), lambda b, i: (0, 0)),
            pl.BlockSpec((1, F_in), lambda b, i: (0, 0)),
            pl.BlockSpec((B, F_in), lambda b, i: (0, 0)),
            pl.BlockSpec((B, F_in), lambda b, i: (0, 0)),
            pl.BlockSpec((F_in, H), lambda b, i: (0, 0)),
            pl.BlockSpec((1, H), lambda b, i: (0, 0)),
        ],
        out_specs=(
            pl.BlockSpec((None, tt, H), lambda b, i: (b, i, 0)),
            pl.BlockSpec((1, H), lambda b, i: (0, 0)),
            pl.BlockSpec((1, H), lambda b, i: (0, 0)),
        ),
        out_shape=(
            jax.ShapeDtypeStruct((B, T, H), f32),
            jax.ShapeDtypeStruct((1, H), f32),
            jax.ShapeDtypeStruct((1, H), f32),
        ),
        compiler_params=acc_params,
    )(xt, sum0, ssq0, g0, be0, w0, b0)

    # ---- K3: BN_1 -> ReLU -> fc_1 + shortcut + residual (fully parallel / megacore) ----
    tail_in_specs = [
        pl.BlockSpec((None, tt, H), lambda b, i: (b, i, 0)),
        pl.BlockSpec((None, tt, F_in), lambda b, i: (b, i, 0)),
        pl.BlockSpec((1, H), lambda b, i: (0, 0)),
        pl.BlockSpec((1, H), lambda b, i: (0, 0)),
        pl.BlockSpec((B, H), lambda b, i: (0, 0)),
        pl.BlockSpec((B, H), lambda b, i: (0, 0)),
        pl.BlockSpec((H, F_out), lambda b, i: (0, 0)),
        pl.BlockSpec((1, F_out), lambda b, i: (0, 0)),
    ]
    tail_args = [net, xt, sum1, ssq1, g1, be1, w1, b1]
    if has_proj:
        tail_in_specs.append(pl.BlockSpec((F_in, F_out), lambda b, i: (0, 0)))
        tail_args.append(ws)

    out_btf = pl.pallas_call(
        _make_tail_kernel(inv_n, has_proj),
        grid=(B, nt),
        in_specs=tail_in_specs,
        out_specs=pl.BlockSpec((None, tt, F_out), lambda b, i: (b, i, 0)),
        out_shape=jax.ShapeDtypeStruct((B, T, F_out), f32),
        compiler_params=pltpu.CompilerParams(
            dimension_semantics=("parallel", "parallel"),
            vmem_limit_bytes=_VMEM_LIMIT),
    )(*tail_args)

    return jnp.transpose(out_btf, (0, 2, 1)).astype(x.dtype)   # back to (B, F_out, T)


# ----------------------------------------------------------------------------- reference

def cresnet_block_conv1d_ref(x, c, p):
    """Pure-JAX reference mirroring the PyTorch forward (training-mode BN)."""
    def conv1x1(h, w, b=None):
        y = jnp.einsum('oc,bct->bot', w[:, :, 0], h)
        return y if b is None else y + b[None, :, None]

    def cbn(h, cc, wg, bg, wb, bb):
        gamma = cc @ wg[:, :, 0].T + bg[None, :]
        beta = cc @ wb[:, :, 0].T + bb[None, :]
        mean = jnp.mean(h, axis=(0, 2), keepdims=True)
        var = jnp.var(h, axis=(0, 2), keepdims=True)
        net = (h - mean) / jnp.sqrt(var + EPS)
        return gamma[:, :, None] * net + beta[:, :, None]

    relu = lambda v: jnp.maximum(v, 0.0)
    net = conv1x1(relu(cbn(x, c, p["bn0_gamma_w"], p["bn0_gamma_b"],
                           p["bn0_beta_w"], p["bn0_beta_b"])), p["fc0_w"], p["fc0_b"])
    dx = conv1x1(relu(cbn(net, c, p["bn1_gamma_w"], p["bn1_gamma_b"],
                          p["bn1_beta_w"], p["bn1_beta_b"])), p["fc1_w"], p["fc1_b"])
    x_s = conv1x1(x, p["shortcut_w"]) if p.get("shortcut_w", None) is not None else x
    return x_s + dx


# ----------------------------------------------------------------------------- test

if __name__ == "__main__":
    B, C_DIM, T = 2, 8, 64
    rng = jax.random.PRNGKey(0)

    def rand(key, shape, scale=0.2):
        return scale * jax.random.normal(key, shape, dtype=jnp.float32)

    def make_params(key, c_dim, size_in, size_h, size_out, proj):
        # PyTorch zero-inits the CBN conv weights and fc_1.weight; random values are used here
        # so the numerical check exercises every path (forward semantics are init-independent).
        ks = jax.random.split(key, 13)
        return {
            "bn0_gamma_w": rand(ks[0], (size_in, c_dim, 1)),
            "bn0_gamma_b": 1.0 + rand(ks[1], (size_in,)),
            "bn0_beta_w": rand(ks[2], (size_in, c_dim, 1)),
            "bn0_beta_b": rand(ks[3], (size_in,)),
            "bn1_gamma_w": rand(ks[4], (size_h, c_dim, 1)),
            "bn1_gamma_b": 1.0 + rand(ks[5], (size_h,)),
            "bn1_beta_w": rand(ks[6], (size_h, c_dim, 1)),
            "bn1_beta_b": rand(ks[7], (size_h,)),
            "fc0_w": rand(ks[8], (size_h, size_in, 1)),
            "fc0_b": rand(ks[9], (size_h,)),
            "fc1_w": rand(ks[10], (size_out, size_h, 1)),
            "fc1_b": rand(ks[11], (size_out,)),
            "shortcut_w": rand(ks[12], (size_out, size_in, 1)) if proj else None,
        }

    cases = [
        ("identity_shortcut", 32, 32, 32, False),   # size_in == size_out -> identity shortcut
        ("conv_shortcut", 32, 48, 40, True),        # size_in != size_out -> 1x1 conv shortcut
    ]

    for name, size_in, size_h, size_out, proj in cases:
        kx, kc, kp, rng = jax.random.split(rng, 4)
        x = jax.random.normal(kx, (B, size_in, T), dtype=jnp.float32)
        c = jax.random.normal(kc, (B, C_DIM), dtype=jnp.float32)
        params = make_params(kp, C_DIM, size_in, size_h, size_out, proj)

        out = jax.block_until_ready(cresnet_block_conv1d(x, c, params))
        ref = jax.block_until_ready(cresnet_block_conv1d_ref(x, c, params))
        np.testing.assert_allclose(np.asarray(out), np.asarray(ref),
                                   rtol=1e-4, atol=1e-4, err_msg=name)

    print("KERNEL_OK")
</pallas_src>

<mosaic_0001>
module attributes {stable_mosaic.version = 11 : i64} {
  func.func @_head_kernel(%arg0: i32, %arg1: i32, %arg2: memref<1x64x32xf32, #tpu.memory_space<vmem>>, %arg3: memref<2x8xf32, #tpu.memory_space<vmem>>, %arg4: memref<8x128xf32, #tpu.memory_space<vmem>>, %arg5: memref<1x128xf32, #tpu.memory_space<vmem>>, %arg6: memref<1x32xf32, #tpu.memory_space<vmem>>, %arg7: memref<1x32xf32, #tpu.memory_space<vmem>>, %arg8: memref<2x128xf32, #tpu.memory_space<vmem>>) attributes {dimension_semantics = [#tpu.dimension_semantics<arbitrary>, #tpu.dimension_semantics<arbitrary>], iteration_bounds = array<i64: 2, 1>, scalar_prefetch = 0 : i64, scratch_operands = 0 : i64, tpu.core_type = #tpu.core_type<tc>, window_params = [{transform_indices = @transform_0, window_bounds = array<i64: 1, 64, 32>}, {pipeline_mode = #tpu.pipeline_mode<synchronous>, transform_indices = @transform_1, window_bounds = array<i64: 2, 8>}, {pipeline_mode = #tpu.pipeline_mode<synchronous>, transform_indices = @transform_2, window_bounds = array<i64: 8, 128>}, {pipeline_mode = #tpu.pipeline_mode<synchronous>, transform_indices = @transform_3, window_bounds = array<i64: 1, 128>}, {pipeline_mode = #tpu.pipeline_mode<synchronous>, transform_indices = @transform_4, window_bounds = array<i64: 1, 32>}, {pipeline_mode = #tpu.pipeline_mode<synchronous>, transform_indices = @transform_5, window_bounds = array<i64: 1, 32>}, {pipeline_mode = #tpu.pipeline_mode<synchronous>, transform_indices = @transform_6, window_bounds = array<i64: 2, 128>}]} {
    %c0_i32 = arith.constant 0 : i32
    %0 = arith.cmpi eq, %arg0, %c0_i32 : i32
    %c0_i32_0 = arith.constant 0 : i32
    %1 = arith.cmpi eq, %arg1, %c0_i32_0 : i32
    %2 = arith.andi %0, %1 : i1
    %3 = arith.extui %2 : i1 to i32
    %c0_i32_1 = arith.constant 0 : i32
    %4 = arith.cmpi ne, %3, %c0_i32_1 : i32
    scf.if %4 {
      %cst_13 = arith.constant 0.000000e+00 : f32
      %18 = vector.broadcast %cst_13 : f32 to vector<1x32xf32>
      %c0_14 = arith.constant 0 : index
      %c0_15 = arith.constant 0 : index
      %19 = vector.load %arg6[%c0_14, %c0_15] : memref<1x32xf32, #tpu.memory_space<vmem>>, vector<1x32xf32>
      tpu.vector_store %arg6[%c0_14, %c0_15], %18 {strides = array<i32>} : memref<1x32xf32, #tpu.memory_space<vmem>>, vector<1x32xf32>,
      %cst_16 = arith.constant 0.000000e+00 : f32
      %20 = vector.broadcast %cst_16 : f32 to vector<1x32xf32>
      %c0_17 = arith.constant 0 : index
      %c0_18 = arith.constant 0 : index
      %21 = vector.load %arg7[%c0_17, %c0_18] : memref<1x32xf32, #tpu.memory_space<vmem>>, vector<1x32xf32>
      tpu.vector_store %arg7[%c0_17, %c0_18], %20 {strides = array<i32>} : memref<1x32xf32, #tpu.memory_space<vmem>>, vector<1x32xf32>,
      %c0_19 = arith.constant 0 : index
      %c0_20 = arith.constant 0 : index
      %22 = vector.load %arg3[%c0_19, %c0_20] : memref<2x8xf32, #tpu.memory_space<vmem>>, vector<2x8xf32>
      %c0_21 = arith.constant 0 : index
      %c0_22 = arith.constant 0 : index
      %23 = vector.load %arg4[%c0_21, %c0_22] : memref<8x128xf32, #tpu.memory_space<vmem>>, vector<8x128xf32>
      %cst_23 = arith.constant dense<0.000000e+00> : vector<2x128xf32>
      %24 = tpu.matmul %22, %23, %cst_23 {dimension_numbers = #tpu.dot_dimension_numbers<[1], [0], [0], [1], [0, 0, 1, 1], [], []>} : vector<2x8xf32>, vector<8x128xf32>, vector<2x128xf32> -> vector<2x128xf32>
      %c0_24 = arith.constant 0 : index
      %c0_25 = arith.constant 0 : index
      %25 = vector.load %arg5[%c0_24, %c0_25] : memref<1x128xf32, #tpu.memory_space<vmem>>, vector<1x128xf32>
      %26 = vector.broadcast %25 : vector<1x128xf32> to vector<2x128xf32>
      %27 = arith.addf %24, %26 : vector<2x128xf32>
      %c0_26 = arith.constant 0 : index
      %c0_27 = arith.constant 0 : index
      %28 = vector.load %arg8[%c0_26, %c0_27] : memref<2x128xf32, #tpu.memory_space<vmem>>, vector<2x128xf32>
      tpu.vector_store %arg8[%c0_26, %c0_27], %27 {strides = array<i32>} : memref<2x128xf32, #tpu.memory_space<vmem>>, vector<2x128xf32>,
    } else {
    }
    %c0 = arith.constant 0 : index
    %c0_2 = arith.constant 0 : index
    %c0_3 = arith.constant 0 : index
    %5 = vector.load %arg2[%c0, %c0_2, %c0_3] : memref<1x64x32xf32, #tpu.memory_space<vmem>>, vector<1x64x32xf32>
    %6 = vector.shape_cast %5 : vector<1x64x32xf32> to vector<64x32xf32>
    %c0_4 = arith.constant 0 : index
    %c0_5 = arith.constant 0 : index
    %7 = vector.load %arg6[%c0_4, %c0_5] : memref<1x32xf32, #tpu.memory_space<vmem>>, vector<1x32xf32>
    %cst = arith.constant dense<0.000000e+00> : vector<32xf32>
    %8 = vector.multi_reduction <add>, %6, %cst [0] : vector<64x32xf32> to vector<32xf32>
    %9 = vector.shape_cast %8 : vector<32xf32> to vector<1x32xf32>
    %10 = arith.addf %7, %9 : vector<1x32xf32>
    %c0_6 = arith.constant 0 : index
    %c0_7 = arith.constant 0 : index
    %11 = vector.load %arg6[%c0_6, %c0_7] : memref<1x32xf32, #tpu.memory_space<vmem>>, vector<1x32xf32>
    tpu.vector_store %arg6[%c0_6, %c0_7], %10 {strides = array<i32>} : memref<1x32xf32, #tpu.memory_space<vmem>>, vector<1x32xf32>,
    %c0_8 = arith.constant 0 : index
    %c0_9 = arith.constant 0 : index
    %12 = vector.load %arg7[%c0_8, %c0_9] : memref<1x32xf32, #tpu.memory_space<vmem>>, vector<1x32xf32>
    %13 = arith.mulf %6, %6 : vector<64x32xf32>
    %cst_10 = arith.constant dense<0.000000e+00> : vector<32xf32>
    %14 = vector.multi_reduction <add>, %13, %cst_10 [0] : vector<64x32xf32> to vector<32xf32>
    %15 = vector.shape_cast %14 : vector<32xf32> to vector<1x32xf32>
    %16 = arith.addf %12, %15 : vector<1x32xf32>
    %c0_11 = arith.constant 0 : index
    %c0_12 = arith.constant 0 : index
    %17 = vector.load %arg7[%c0_11, %c0_12] : memref<1x32xf32, #tpu.memory_space<vmem>>, vector<1x32xf32>
    tpu.vector_store %arg7[%c0_11, %c0_12], %16 {strides = array<i32>} : memref<1x32xf32, #tpu.memory_space<vmem>>, vector<1x32xf32>,
    return
  }
  func.func @transform_0(%arg0: i32, %arg1: i32) -> (i32, i32, i32) {
    %c0_i32 = arith.constant 0 : i32
    %c0_i32_0 = arith.constant 0 : i32
    return %arg0, %arg1, %c0_i32 : i32, i32, i32
  }
  func.func @transform_1(%arg0: i32, %arg1: i32) -> (i32, i32) {
    %c0_i32 = arith.constant 0 : i32
    %c0_i32_0 = arith.constant 0 : i32
    %c0_i32_1 = arith.constant 0 : i32
    return %c0_i32, %c0_i32_0 : i32, i32
  }
  func.func @transform_2(%arg0: i32, %arg1: i32) -> (i32, i32) {
    %c0_i32 = arith.constant 0 : i32
    %c0_i32_0 = arith.constant 0 : i32
    %c0_i32_1 = arith.constant 0 : i32
    return %c0_i32, %c0_i32_0 : i32, i32
  }
  func.func @transform_3(%arg0: i32, %arg1: i32) -> (i32, i32) {
    %c0_i32 = arith.constant 0 : i32
    %c0_i32_0 = arith.constant 0 : i32
    %c0_i32_1 = arith.constant 0 : i32
    return %c0_i32, %c0_i32_0 : i32, i32
  }
  func.func @transform_4(%arg0: i32, %arg1: i32) -> (i32, i32) {
    %c0_i32 = arith.constant 0 : i32
    %c0_i32_0 = arith.constant 0 : i32
    %c0_i32_1 = arith.constant 0 : i32
    return %c0_i32, %c0_i32_0 : i32, i32
  }
  func.func @transform_5(%arg0: i32, %arg1: i32) -> (i32, i32) {
    %c0_i32 = arith.constant 0 : i32
    %c0_i32_0 = arith.constant 0 : i32
    %c0_i32_1 = arith.constant 0 : i32
    return %c0_i32, %c0_i32_0 : i32, i32
  }
  func.func @transform_6(%arg0: i32, %arg1: i32) -> (i32, i32) {
    %c0_i32 = arith.constant 0 : i32
    %c0_i32_0 = arith.constant 0 : i32
    %c0_i32_1 = arith.constant 0 : i32
    return %c0_i32, %c0_i32_0 : i32, i32
  }
}

</mosaic_0001>

<bundles_post_ra>
// kernel: tpu_custom_call.1
= control target key start
LH: loop header
LB: loop body
LE: loop exit
PB: predicated region body
PF: predicated region fallthrough
CT: control target
= control target key end

     0   :  { %12 = vsyncpa [#allocation3], 0  ;;  %s897_s0 = inlined_call_operand.vmem [shape: f32[2,64,32], index: 0, kind: input, shape index: {}]   ;;  %s898_s1 = inlined_call_operand.vmem [shape: f32[2,8], index: 1, kind: input, shape index: {}]   ;;  %s899_s2 = inlined_call_operand.vmem [shape: f32[8,128], index: 2, kind: input, shape index: {}]   ;;  %s900_s3 = inlined_call_operand.vmem [shape: f32[1,128], index: 3, kind: input, shape index: {}]   ;;  %s901_s4 = inlined_call_operand.hbm [shape: f32[1,32], index: 4, kind: output, shape index: {0}]   ;;  %s902_s5 = inlined_call_operand.hbm [shape: f32[1,32], index: 5, kind: output, shape index: {1}]   ;;  %s903_s6 = inlined_call_operand.hbm [shape: f32[2,128], index: 6, kind: output, shape index: {2}]  }
   0x1   :  { %13 = vsyncpa [#allocation5], 0  ;;  %s748_s21 = smov 0   ;;  %s750_s22 = smov 0  }
   0x2   :  { %s752_s23 = smov 0  }
   0x3 LB: > { %s525_s24 = sadd.s32 4294967295, %s706_s23   ;;  %s31_s25 = sadd.s32 1, %s702_s22  ;;  %s706_s23 = sphi %s752_s23, %s19_s23   ;;  %s702_s22 = sphi %s750_s22, %s906_s22   ;;  %s698_s21 = sphi %s748_s21, %s905_s21  }
   0x4   : > { %p33_p0 = scmp.ge.s32.totalorder %s31_s25, 2  ;;  %p528_p1 = scmp.ge.s32.totalorder %s706_s23, 1 }
   0x5   : > { %p223_p2 = scmp.lt.s32.totalorder %s706_s23, 3 }
   0x6   : > { %s908_s25 = smov (%p33_p0, %s31_s25), 0 }
   0x7   : > { %p224_p3 = pnand %p528_p1, %p223_p2 }
   0x8   : > { %p253_p4 = scmp.lt.s32.totalorder (!%p224_p3), %s698_s21, 1  ;;  %p262_p5 = scmp.eq.s32.totalorder (!%p224_p3), %s698_s21, 0 }
   0x9   : > { %227 = sbr.rel (%p224_p3) target bundleno = 326 (0x146), region = 36 }
  0x10   : > { %s910_s21 = smov (!%p253_p4, %s698_s21), 1  ;;  %267 = sbr.rel (!%p262_p5) target bundleno = 235 (0xeb), region = 40 }
  0x11   : > { %s542_s26 = sshll.u32 %s910_s21, 6  ;;  %vm268_vm0 = vcmask (%p262_p5), 253952   ;;  %v272_v0 = vld [vmem:[%s899_s2] sm:$0xff] (%p262_p5)  ;;  %v708_v2 = vmov (%p262_p5), 0.0   ;;  %vm709_vm1 = vmmov (%p262_p5), 0   ;;  %vm280_vm2 = vcmask (%p262_p5), 64512  }
  0x12   : > { %s770_s29 = scalar_lea.vmem %s897_s0, %s542_s26  ;;  %v271_v1 = vld [vmem:[%s898_s1] sm:$0x3] (%p262_p5)  ;;  %269 = vst.msk [vmem:[#allocation2] sm:$0x1] (%p262_p5), %vm268_vm0, %v708_v2  ;;  %270 = vst.msk [vmem:[#allocation4] sm:$0x1] (%p262_p5), %vm268_vm0, %v708_v2  ;;  %546 = vmatprep.subr.mxu0 (%p262_p5), %v708_v2  ;;  %548 = vmatprep.mubr.msk.f32.mxu0 (%p262_p5), %vm709_vm1, %v708_v2 }
  0x13   : > { %547 = vmatpush3.msra.mxu0 (%p262_p5), %v272_v0  ;;  %v532_v3 = vld [vmem:[%s900_s3] ss:$0 sm:$0xff] (%p262_p5) }
  0x14   : > { %549 = vmatmul.mubr.msk.f32.vlgmr.msra.gmra.mrb[0].mxu0 (%p262_p5), %vm280_vm2, %v271_v1 }
  0xe7   : > { %v350_v4 = vpop.f32.mrb[0].mxu0 }
  0xe8   : > { %v351_v5 = vadd.f32 %v532_v3, %v350_v4  ;;  %v550_v6 = vpop.f32.mrb[1].mxu0 }
  0xea   : > { %354 = vst [vmem:[#allocation6] sm:$0x3] %v351_v5 }
  0xeb PF: > { %v355_v7 = vld [vmem:[%s770_s29] sm:$0xff]  ;;  %v356_v8 = vld [vmem:[%s770_s29 + $0x8] sm:$0xff]  ;;  %v357_v9 = vld [vmem:[%s770_s29 + $0x10] sm:$0xff]  ;;  %vm364_vm3 = vcmask 261120   ;;  %s710_s12 = smov [#allocation4]   ;;  %s711_s14 = smov [#allocation2]  }
  0xec   : > { %v358_v10 = vld [vmem:[%s770_s29 + $0x18] sm:$0xff]  ;;  %v359_v11 = vld [vmem:[%s770_s29 + $0x20] sm:$0xff]  ;;  %v390_v12 = vmul.f32 %v355_v7, %v355_v7  ;;  %v391_v13 = vmul.f32 %v356_v8, %v356_v8  ;;  %v392_v14 = vmul.f32 %v357_v9, %v357_v9  ;;  %v360_v15 = vld [vmem:[%s770_s29 + $0x28] sm:$0xff]  ;;  %v365_v17 = vsel %vm364_vm3, %v355_v7, 0.0  ;;  %s439_s13 = sshll.u32 %s710_s12, 4  ;;  %s428_s15 = sshll.u32 %s711_s14, 4  ;;  %s440_s13 = int_to_ptr.vmem [resolvable:$true] %s439_s13  ;;  %s811_s15 = int_to_ptr.vmem [resolvable:$true] %s428_s15 }
  0xed   : > { %v393_v16 = vmul.f32 %v358_v10, %v358_v10  ;;  %v366_v18 = vsel %vm364_vm3, %v356_v8, 0.0  ;;  %v394_v19 = vmul.f32 %v359_v11, %v359_v11  ;;  %v361_v22 = vld [vmem:[%s770_s29 + $0x30] sm:$0xff]  ;;  %v395_v25 = vmul.f32 %v360_v15, %v360_v15  ;;  %v362_v28 = vld [vmem:[%s770_s29 + $0x38] sm:$0xff]  ;;  %v389_v62 = vld [vmem:[#allocation4] sm:$0x1]  ;;  %p807_p6 = scmp.eq.s32.totalorder %s525_s24, 1  ;;  %p605_p10 = scmp.lt.s32.totalorder %s440_s13, %s440_s13 }
  0xee   : > { %v398_v20 = vsel %vm364_vm3, %v390_v12, 0.0  ;;  %v399_v21 = vsel %vm364_vm3, %v391_v13, 0.0  ;;  %v401_v24 = vsel %vm364_vm3, %v392_v14, 0.0  ;;  %v367_v27 = vadd.f32 %v366_v18, %v365_v17  ;;  %v363_v1 = vld [vmem:[#allocation2] sm:$0x1]  ;;  %s712_s17 = smov [#allocation6]  }
  0xef   : > { %v400_v23 = vadd.f32 %v399_v21, %v398_v20  ;;  %v403_v26 = vsel %vm364_vm3, %v393_v16, 0.0  ;;  %v368_v30 = vsel %vm364_vm3, %v357_v9, 0.0  ;;  %v370_v31 = vsel %vm364_vm3, %v358_v10, 0.0  ;;  %s450_s18 = sshll.u32 %s712_s17, 4  ;;  %s598_s19 = scalar_lea.vmem %s440_s13, 16  ;;  %s813_s18 = int_to_ptr.vmem [resolvable:$true] %s450_s18 }
  0xf0   : > { %v396_v32 = vmul.f32 %v361_v22, %v361_v22  ;;  %v405_v33 = vsel %vm364_vm3, %v394_v19, 0.0  ;;  %v369_v34 = vadd.f32 %v368_v30, %v367_v27  ;;  %v372_v36 = vsel %vm364_vm3, %v359_v11, 0.0  ;;  %p599_p7 = scmp.ne.s32.totalorder %s440_s13, %s598_s19  ;;  %s604_s20 = scalar_lea.vmem %s440_s13, 32 }
  0xf1   : > { %v402_v29 = vadd.f32 %v401_v24, %v400_v23  ;;  %v397_v37 = vmul.f32 %v362_v28, %v362_v28  ;;  %v407_v38 = vsel %vm364_vm3, %v395_v25, 0.0  ;;  %v374_v41 = vsel %vm364_vm3, %v360_v15, 0.0  ;;  %p606_p11 = scmp.lt.s32.totalorder %s604_s20, %s598_s19 }
  0xf2   : > { %v371_v39 = vadd.f32 %v370_v31, %v369_v34  ;;  %v409_v42 = vsel %vm364_vm3, %v396_v32, 0.0  ;;  %v376_v45 = vsel %vm364_vm3, %v361_v22, 0.0  ;;  %v378_v49 = vsel %vm364_vm3, %v362_v28, 0.0  ;;  %p600_p8 = pnand %p599_p7, %p807_p6 }
  0xf3   : > { %v404_v35 = vadd.f32 %v403_v26, %v402_v29  ;;  %v411_v46 = vsel %vm364_vm3, %v397_v37, 0.0  ;;  %vm387_vm4 = vcmask 253952   ;;  %p607_p12 = por %p606_p11, %p605_p10 }
  0xf4   : > { %v373_v43 = vadd.f32 %v372_v36, %v371_v39  ;;  %p601_p9 = pneg %p600_p8 }
  0xf5   : > { %v406_v40 = vadd.f32 %v405_v33, %v404_v35 }
  0xf6   : > { %v375_v47 = vadd.f32 %v374_v41, %v373_v43  ;;  %p608_p13 = pnand %p607_p12, %p601_p9 }
  0xf7   : > { %v408_v44 = vadd.f32 %v407_v38, %v406_v40 }
  0xf8   : > { %v377_v50 = vadd.f32 %v376_v45, %v375_v47 }
  0xf9   : > { %v410_v48 = vadd.f32 %v409_v42, %v408_v44 }
  0xfa   : > { %v379_v52 = vadd.f32 %v378_v49, %v377_v50 }
  0xfb   : > { %v412_v51 = vadd.f32 %v411_v46, %v410_v48 }
  0xfc   : > { %v380_v54 = vrot.slane %v379_v52, 4 }
  0xfd   : > { %v413_v53 = vrot.slane %v412_v51, 4 }
  0xfe   : > { %v381_v56 = vadd.f32 %v380_v54, %v379_v52 }
  0xff   : > { %v414_v55 = vadd.f32 %v413_v53, %v412_v51 }
 0x100   : > { %v382_v58 = vrot.slane %v381_v56, 2 }
 0x101   : > { %v415_v57 = vrot.slane %v414_v55, 2 }
 0x102   : > { %v383_v60 = vadd.f32 %v382_v58, %v381_v56 }
 0x103   : > { %v416_v59 = vadd.f32 %v415_v57, %v414_v55 }
 0x104   : > { %v384_v63 = vrot.slane %v383_v60, 1 }
 0x105   : > { %v417_v61 = vrot.slane %v416_v59, 1 }
 0x106   : > { %v385_v2 = vadd.f32 %v384_v63, %v383_v60 }
 0x107   : > { %v418_v0 = vadd.f32 %v417_v61, %v416_v59 }
 0x108   : > { %v386_v4 = vadd.f32 %v385_v2, %v363_v1 }
 0x109   : > { %v419_v3 = vadd.f32 %v418_v0, %v389_v62 }
 0x10a   : > { %388 = vst.msk [vmem:[#allocation2] sm:$0x1] %vm387_vm4, %v386_v4 }
 0x10b   : > { %420 = vst.msk [vmem:[#allocation4] sm:$0x1] %vm387_vm4, %v419_v3 }
 0x10c   : > { %611 = shalt.err (!%p608_p13)
}
 0x10d   : > { %s612_s26 = scalar_lea.hbm %s902_s5, 16 }
 0x10e   : > { %p613_p0 = scmp.ne.s32.totalorder %s902_s5, %s612_s26  ;;  %p618_p3 = scmp.lt.u32.totalorder %s612_s26, %s902_s5 }
 0x110   : > { %p614_p1 = pnand %p613_p0, %p807_p6 }
 0x112   : > { %p615_p2 = pneg %p614_p1 }
 0x114   : > { %p620_p4 = pnand %p618_p3, %p615_p2 }
 0x116   : > { %623 = shalt.err (!%p620_p4)
}
 0x117   : > { %554 = dma.vmem_to_hbm [thread:$0]  (%p807_p6), %s440_s13, 16, %s902_s5, [#allocation5]  }
 0x118   : > { %s624_s9 = scalar_lea.vmem %s811_s15, 16  ;;  %s630_s10 = scalar_lea.vmem %s811_s15, 32 }
 0x119   : > { %p625_p5 = scmp.ne.s32.totalorder %s811_s15, %s624_s9  ;;  %p631_p9 = scmp.lt.s32.totalorder %s811_s15, %s811_s15 }
 0x11a   : > { %p632_p10 = scmp.lt.s32.totalorder %s630_s10, %s624_s9 }
 0x11b   : > { %p626_p7 = pnand %p625_p5, %p807_p6 }
 0x11c   : > { %p633_p11 = por %p632_p10, %p631_p9 }
 0x11d   : > { %p627_p8 = pneg %p626_p7 }
 0x11f   : > { %p634_p12 = pnand %p633_p11, %p627_p8 }
 0x121   : > { %637 = shalt.err (!%p634_p12)
}
 0x122   : > { %s638_s14 = scalar_lea.hbm %s901_s4, 16 }
 0x123   : > { %p639_p13 = scmp.ne.s32.totalorder %s901_s4, %s638_s14  ;;  %p644_p2 = scmp.lt.u32.totalorder %s638_s14, %s901_s4 }
 0x125   : > { %p640_p0 = pnand %p639_p13, %p807_p6 }
 0x127   : > { %p641_p1 = pneg %p640_p0 }
 0x129   : > { %p646_p3 = pnand %p644_p2, %p641_p1 }
 0x12b   : > { %649 = shalt.err (!%p646_p3)
}
 0x12c   : > { %552 = dma.vmem_to_hbm [thread:$0]  (%p807_p6), %s811_s15, 16, %s901_s4, [#allocation3]  }
 0x12d   : > { %s650_s26 = scalar_lea.vmem %s813_s18, 32  ;;  %p657_p8 = scmp.lt.s32.totalorder %s813_s18, %s813_s18 }
 0x12e   : > { %p651_p4 = scmp.ne.s32.totalorder %s813_s18, %s650_s26  ;;  %p658_p9 = scmp.lt.s32.totalorder %s650_s26, %s650_s26 }
 0x130   : > { %p652_p5 = pnand %p651_p4, %p807_p6  ;;  %p659_p10 = por %p658_p9, %p657_p8 }
 0x132   : > { %p653_p7 = pneg %p652_p5 }
 0x134   : > { %p660_p11 = pnand %p659_p10, %p653_p7 }
 0x136   : > { %663 = shalt.err (!%p660_p11)
}
 0x137   : > { %s664_s29 = scalar_lea.hbm %s903_s6, 32 }
 0x138   : > { %p665_p12 = scmp.ne.s32.totalorder %s903_s6, %s664_s29  ;;  %p670_p1 = scmp.lt.u32.totalorder %s664_s29, %s903_s6 }
 0x13a   : > { %p666_p13 = pnand %p665_p12, %p807_p6 }
 0x13c   : > { %p667_p0 = pneg %p666_p13 }
 0x13e   : > { %p672_p2 = pnand %p670_p1, %p667_p0 }
 0x140   : > { %675 = shalt.err (!%p672_p2)
}
 0x141   : > { %556 = dma.vmem_to_hbm [thread:$0]  (%p807_p6), %s813_s18, 32, %s903_s6, [#allocation5]  }
 0x142   : > { %689 = dma.done.wait (%p807_p6), [#allocation3], 16  }
 0x143   : > { %691 = vsyncadd (%p807_p6), [#allocation3], 4294967280 }
 0x144   : > { %693 = dma.done.wait (%p807_p6), [#allocation5], 48  }
 0x145   : > { %695 = vsyncadd (%p807_p6), [#allocation5], 4294967248 }
 0x146 PF: > { %s19_s23 = sadd.s32 1, %s706_s23   ;;  %s905_s21 = smov %s702_s22 }
 0x147   : > { %p16_p3 = scmp.ge.s32.totalorder %s19_s23, 4   ;;  %s906_s22 = smov %s908_s25 }
 0x149   :  { %18 = sbr.rel (!%p16_p3) target bundleno = 3 (0x3), region = 83 }
 0x150   :  { %471 = vsyncpa [#allocation3], 1 }
 0x151   :  { %473 = vsyncpa [#allocation3 + $0x1], 1 }
 0x152   :  { %474 = vsyncpa [#allocation5], 1 }

</bundles_post_ra>
